<compile_context>
chip_gen: v7x
topology: tpu7x:2x2x1
jax: 0.10.0
libtpu: 0.0.40
codegen_flags: <defaults>
</compile_context>

<pallas_src>
import functools

import jax
import jax.numpy as jnp
from jax import lax
from jax.experimental import pallas as pl
from jax.experimental.pallas import tpu as pltpu

BN_EPS = 1e-5
LANE = 128
MAX_ROW_TILE = 512
VMEM_LIMIT = 32 * 1024 * 1024


def _round_up(a, b):
    return (a + b - 1) // b * b


# --------------------------------------------------------------------------------------
# Kernels
# --------------------------------------------------------------------------------------
def norm_matmul_stats_kernel(n_ref, h_ref, ss_ref, w_ref, b_ref, y_ref, stats_ref):
    """One layer step: x = h*scale + shift (BN of previous layer, identity for layer 1),
    y = x @ W + b (bf16 MXU, f32 acc), plus single-pass per-tile BN partial stats."""
    # Normalize previous layer's linear output in f32 (fused scale/shift).
    xn = h_ref[...] * ss_ref[0:1, :] + ss_ref[1:2, :]
    # MXU matmul: bf16 operands, f32 accumulation.
    y = jnp.dot(xn.astype(jnp.bfloat16), w_ref[...],
                preferred_element_type=jnp.float32) + b_ref[...]
    y_ref[...] = y

    # Single-pass BN statistics for this batch tile; mask out padded batch rows.
    tile = y.shape[0]
    rows = lax.broadcasted_iota(jnp.int32, y.shape, 0) + pl.program_id(0) * tile
    valid = rows < n_ref[0]
    ym = jnp.where(valid, y, 0.0)
    s = jnp.sum(ym, axis=0, keepdims=True)        # (1, F)
    sq = jnp.sum(ym * ym, axis=0, keepdims=True)  # (1, F)
    stats_ref[...] = jnp.concatenate([s, sq], axis=0)[None]  # (1, 2, F)


def norm_kernel(h_ref, ss_ref, o_ref):
    """Final BatchNorm applied as a fused multiply-add (lane-dense store)."""
    o_ref[...] = h_ref[...] * ss_ref[0:1, :] + ss_ref[1:2, :]


# --------------------------------------------------------------------------------------
# pallas_call wrappers
# --------------------------------------------------------------------------------------
def _layer_call(n_valid, h, ss, w, b, tile_n, nb):
    n_pad, f_in = h.shape
    f_out = w.shape[1]
    bytes_accessed = int(h.size * 4 + ss.size * 4 + w.size * 2 + b.size * 4
                         + n_pad * f_out * 4 + nb * 2 * f_out * 4)
    return pl.pallas_call(
        norm_matmul_stats_kernel,
        out_shape=(
            jax.ShapeDtypeStruct((n_pad, f_out), jnp.float32),
            jax.ShapeDtypeStruct((nb, 2, f_out), jnp.float32),
        ),
        grid_spec=pltpu.PrefetchScalarGridSpec(
            num_scalar_prefetch=1,
            grid=(nb,),
            in_specs=[
                pl.BlockSpec((tile_n, f_in), lambda i, n: (i, 0)),   # activations (tiled)
                pl.BlockSpec((2, f_in), lambda i, n: (0, 0)),        # packed [scale; shift]
                pl.BlockSpec((f_in, f_out), lambda i, n: (0, 0)),    # weight (pinned)
                pl.BlockSpec((1, f_out), lambda i, n: (0, 0)),       # bias (pinned)
            ],
            out_specs=[
                pl.BlockSpec((tile_n, f_out), lambda i, n: (i, 0)),      # y (tiled)
                pl.BlockSpec((1, 2, f_out), lambda i, n: (i, 0, 0)),     # partial stats
            ],
        ),
        compiler_params=pltpu.CompilerParams(
            dimension_semantics=("parallel",),
            vmem_limit_bytes=VMEM_LIMIT,
        ),
        cost_estimate=pl.CostEstimate(
            flops=int(2 * n_pad * f_in * f_out),
            transcendentals=0,
            bytes_accessed=bytes_accessed,
        ),
    )(n_valid, h, ss, w, b)


def _norm_call(h, ss, tile_n, nb):
    n_pad, f = h.shape
    return pl.pallas_call(
        norm_kernel,
        out_shape=jax.ShapeDtypeStruct((n_pad, f), jnp.float32),
        grid=(nb,),
        in_specs=[
            pl.BlockSpec((tile_n, f), lambda i: (i, 0)),
            pl.BlockSpec((2, f), lambda i: (0, 0)),
        ],
        out_specs=pl.BlockSpec((tile_n, f), lambda i: (i, 0)),
        compiler_params=pltpu.CompilerParams(
            dimension_semantics=("parallel",),
            vmem_limit_bytes=VMEM_LIMIT,
        ),
        cost_estimate=pl.CostEstimate(
            flops=int(2 * n_pad * f),
            transcendentals=0,
            bytes_accessed=int(2 * n_pad * f * 4 + 2 * f * 4),
        ),
    )(h, ss)


# --------------------------------------------------------------------------------------
# Forward pass
# --------------------------------------------------------------------------------------
@functools.partial(jax.jit, static_argnames=("dim_out",))
def linear_net_forward(x, packed, *, dim_out):
    n, dim_in = x.shape
    tile_n = min(MAX_ROW_TILE, _round_up(n, 8))
    n_pad = _round_up(n, tile_n)
    nb = n_pad // tile_n

    f_in0 = packed["w"][0].shape[0]
    x_pad = jnp.zeros((n_pad, f_in0), jnp.float32).at[:n, :dim_in].set(x)
    n_valid = jnp.array([n], jnp.int32)

    # Identity scale/shift for the first layer's (raw) input.
    ss = jnp.concatenate(
        [jnp.ones((1, f_in0), jnp.float32), jnp.zeros((1, f_in0), jnp.float32)], axis=0)

    h = x_pad
    inv_n = 1.0 / n
    for i in range(3):
        y, stats = _layer_call(n_valid, h, ss, packed["w"][i], packed["b"][i], tile_n, nb)
        tot = jnp.sum(stats, axis=0)                               # (2, F)
        mean = tot[0] * inv_n                                      # (F,)
        var = jnp.maximum(tot[1] * inv_n - mean * mean, 0.0)       # biased var, f32
        scale = packed["g"][i] * lax.rsqrt(var + BN_EPS)           # (1, F)
        shift = packed["be"][i] - mean * scale                     # (1, F)
        ss = jnp.concatenate([scale, shift], axis=0)               # (2, F)
        h = y

    out_pad = _norm_call(h, ss, tile_n, nb)                        # lane-dense store
    return out_pad[:n, :dim_out]


# --------------------------------------------------------------------------------------
# Parameter construction
# --------------------------------------------------------------------------------------
def init_params(key, dim_in, dim_out):
    """PyTorch-style fan-in uniform init for Linear; gamma=1, beta=0 for BatchNorm1d.
    Weights kept transposed as [fan_in, fan_out] (y = x @ W + b == x @ W_pt.T + b)."""
    dims = [dim_in, 2 * dim_in, 2 * dim_out, dim_out]
    raw = {}
    for i in range(3):
        fi, fo = dims[i], dims[i + 1]
        key, kw, kb = jax.random.split(key, 3)
        bound = 1.0 / float(fi) ** 0.5
        raw[f"w{i}"] = jax.random.uniform(kw, (fi, fo), jnp.float32, -bound, bound)
        raw[f"b{i}"] = jax.random.uniform(kb, (1, fo), jnp.float32, -bound, bound)
        raw[f"g{i}"] = jnp.ones((1, fo), jnp.float32)
        raw[f"be{i}"] = jnp.zeros((1, fo), jnp.float32)
    return raw


def pack_params(raw, dim_in, dim_out):
    """Zero-pad every feature dim up to a multiple of 128 lanes; weights -> bf16."""
    dims = [dim_in, 2 * dim_in, 2 * dim_out, dim_out]
    fpad = [_round_up(d, LANE) for d in dims]
    w, b, g, be = [], [], [], []
    for i in range(3):
        fi, fo = dims[i], dims[i + 1]
        fpi, fpo = fpad[i], fpad[i + 1]
        wp = jnp.zeros((fpi, fpo), jnp.float32).at[:fi, :fo].set(raw[f"w{i}"])
        w.append(wp.astype(jnp.bfloat16))
        b.append(jnp.zeros((1, fpo), jnp.float32).at[:, :fo].set(raw[f"b{i}"]))
        g.append(jnp.zeros((1, fpo), jnp.float32).at[:, :fo].set(raw[f"g{i}"]))
        be.append(jnp.zeros((1, fpo), jnp.float32).at[:, :fo].set(raw[f"be{i}"]))
    return {"w": tuple(w), "b": tuple(b), "g": tuple(g), "be": tuple(be)}


# --------------------------------------------------------------------------------------
# Plain-JAX reference (same math: bf16 matmul operands, f32 BN, biased variance)
# --------------------------------------------------------------------------------------
def linear_net_reference(x, raw):
    h = x
    for i in range(3):
        y = jnp.dot(h.astype(jnp.bfloat16), raw[f"w{i}"].astype(jnp.bfloat16),
                    preferred_element_type=jnp.float32) + raw[f"b{i}"]
        mean = jnp.mean(y, axis=0, keepdims=True)
        var = jnp.mean((y - mean) ** 2, axis=0, keepdims=True)
        h = (y - mean) * lax.rsqrt(var + BN_EPS) * raw[f"g{i}"] + raw[f"be{i}"]
    return h


if __name__ == "__main__":
    dim_in, dim_out, batch = 32, 16, 8

    key = jax.random.PRNGKey(0)
    key, kx = jax.random.split(key)
    x = jax.random.normal(kx, (batch, dim_in), jnp.float32)

    raw_params = init_params(key, dim_in, dim_out)
    packed_params = pack_params(raw_params, dim_in, dim_out)

    out = linear_net_forward(x, packed_params, dim_out=dim_out)
    out = jax.block_until_ready(out)

    ref = linear_net_reference(x, raw_params)
    assert out.shape == (batch, dim_out)
    assert jnp.allclose(out, ref, atol=5e-3, rtol=5e-3), "mismatch vs reference"

    print("KERNEL_OK")
</pallas_src>

<mosaic_0001>
module attributes {stable_mosaic.version = 11 : i64} {
  func.func @norm_matmul_stats_kernel(%arg0: i32, %arg1: memref<1xi32, #tpu.memory_space<smem>>, %arg2: memref<8x128xf32, #tpu.memory_space<vmem>>, %arg3: memref<2x128xf32, #tpu.memory_space<vmem>>, %arg4: memref<128x128xbf16, #tpu.memory_space<vmem>>, %arg5: memref<1x128xf32, #tpu.memory_space<vmem>>, %arg6: memref<8x128xf32, #tpu.memory_space<vmem>>, %arg7: memref<1x2x128xf32, #tpu.memory_space<vmem>>) attributes {dimension_semantics = [#tpu.dimension_semantics<parallel>], iteration_bounds = array<i64: 1>, scalar_prefetch = 1 : i64, scratch_operands = 0 : i64, tpu.core_type = #tpu.core_type<tc>, window_params = [{transform_indices = @transform_0, window_bounds = array<i64: 8, 128>}, {pipeline_mode = #tpu.pipeline_mode<synchronous>, transform_indices = @transform_1, window_bounds = array<i64: 2, 128>}, {pipeline_mode = #tpu.pipeline_mode<synchronous>, transform_indices = @transform_2, window_bounds = array<i64: 128, 128>}, {pipeline_mode = #tpu.pipeline_mode<synchronous>, transform_indices = @transform_3, window_bounds = array<i64: 1, 128>}, {transform_indices = @transform_4, window_bounds = array<i64: 8, 128>}, {transform_indices = @transform_5, window_bounds = array<i64: 1, 2, 128>}]} {
    %c0 = arith.constant 0 : index
    %c0_0 = arith.constant 0 : index
    %0 = vector.load %arg2[%c0, %c0_0] : memref<8x128xf32, #tpu.memory_space<vmem>>, vector<8x128xf32>
    %c0_1 = arith.constant 0 : index
    %c0_2 = arith.constant 0 : index
    %1 = vector.load %arg3[%c0_1, %c0_2] : memref<2x128xf32, #tpu.memory_space<vmem>>, vector<1x128xf32>
    %2 = vector.broadcast %1 : vector<1x128xf32> to vector<8x128xf32>
    %3 = arith.mulf %0, %2 : vector<8x128xf32>
    %c1 = arith.constant 1 : index
    %c0_3 = arith.constant 0 : index
    %4 = vector.load %arg3[%c1, %c0_3] : memref<2x128xf32, #tpu.memory_space<vmem>>, vector<1x128xf32>
    %5 = vector.broadcast %4 : vector<1x128xf32> to vector<8x128xf32>
    %6 = arith.addf %3, %5 : vector<8x128xf32>
    %7 = arith.truncf %6 : vector<8x128xf32> to vector<8x128xbf16>
    %c0_4 = arith.constant 0 : index
    %c0_5 = arith.constant 0 : index
    %8 = vector.load %arg4[%c0_4, %c0_5] : memref<128x128xbf16, #tpu.memory_space<vmem>>, vector<128x128xbf16>
    %cst = arith.constant dense<0.000000e+00> : vector<8x128xf32>
    %9 = tpu.matmul %7, %8, %cst {dimension_numbers = #tpu.dot_dimension_numbers<[1], [0], [0], [1], [0, 0, 1, 1], [], []>} : vector<8x128xbf16>, vector<128x128xbf16>, vector<8x128xf32> -> vector<8x128xf32>
    %c0_6 = arith.constant 0 : index
    %c0_7 = arith.constant 0 : index
    %10 = vector.load %arg5[%c0_6, %c0_7] : memref<1x128xf32, #tpu.memory_space<vmem>>, vector<1x128xf32>
    %11 = vector.broadcast %10 : vector<1x128xf32> to vector<8x128xf32>
    %12 = arith.addf %9, %11 : vector<8x128xf32>
    %c0_8 = arith.constant 0 : index
    %c0_9 = arith.constant 0 : index
    %13 = vector.load %arg6[%c0_8, %c0_9] : memref<8x128xf32, #tpu.memory_space<vmem>>, vector<8x128xf32>
    tpu.vector_store %arg6[%c0_8, %c0_9], %12 {strides = array<i32>} : memref<8x128xf32, #tpu.memory_space<vmem>>, vector<8x128xf32>,
    %14 = tpu.iota {dimensions = array<i32: 0>} : vector<8x128xi32>
    %c8_i32 = arith.constant 8 : i32
    %15 = arith.muli %arg0, %c8_i32 : i32
    %16 = vector.broadcast %15 : i32 to vector<8x128xi32>
    %17 = arith.addi %14, %16 : vector<8x128xi32>
    %c0_10 = arith.constant 0 : index
    %18 = memref.load %arg1[%c0_10] : memref<1xi32, #tpu.memory_space<smem>>
    %19 = vector.broadcast %18 : i32 to vector<8x128xi32>
    %20 = arith.cmpi slt, %17, %19 : vector<8x128xi32>
    %cst_11 = arith.constant 0.000000e+00 : f32
    %21 = vector.broadcast %cst_11 : f32 to vector<8x128xf32>
    %22 = arith.select %20, %12, %21 : vector<8x128xi1>, vector<8x128xf32>
    %cst_12 = arith.constant dense<0.000000e+00> : vector<128xf32>
    %23 = vector.multi_reduction <add>, %22, %cst_12 [0] : vector<8x128xf32> to vector<128xf32>
    %24 = vector.shape_cast %23 : vector<128xf32> to vector<1x128xf32>
    %25 = arith.mulf %22, %22 : vector<8x128xf32>
    %cst_13 = arith.constant dense<0.000000e+00> : vector<128xf32>
    %26 = vector.multi_reduction <add>, %25, %cst_13 [0] : vector<8x128xf32> to vector<128xf32>
    %27 = vector.shape_cast %26 : vector<128xf32> to vector<1x128xf32>
    %28 = tpu.concatenate %24, %27 in 0 : vector<1x128xf32>, vector<1x128xf32> -> vector<2x128xf32>
    %29 = vector.shape_cast %28 : vector<2x128xf32> to vector<1x2x128xf32>
    %c0_14 = arith.constant 0 : index
    %c0_15 = arith.constant 0 : index
    %c0_16 = arith.constant 0 : index
    %30 = vector.load %arg7[%c0_14, %c0_15, %c0_16] : memref<1x2x128xf32, #tpu.memory_space<vmem>>, vector<1x2x128xf32>
    tpu.vector_store %arg7[%c0_14, %c0_15, %c0_16], %29 {strides = array<i32>} : memref<1x2x128xf32, #tpu.memory_space<vmem>>, vector<1x2x128xf32>,
    return
  }
  func.func @transform_0(%arg0: i32, %arg1: memref<1xi32, #tpu.memory_space<smem>>) -> (i32, i32) {
    %c0_i32 = arith.constant 0 : i32
    %c0_i32_0 = arith.constant 0 : i32
    return %arg0, %c0_i32 : i32, i32
  }
  func.func @transform_1(%arg0: i32, %arg1: memref<1xi32, #tpu.memory_space<smem>>) -> (i32, i32) {
    %c0_i32 = arith.constant 0 : i32
    %c0_i32_0 = arith.constant 0 : i32
    %c0_i32_1 = arith.constant 0 : i32
    return %c0_i32, %c0_i32_0 : i32, i32
  }
  func.func @transform_2(%arg0: i32, %arg1: memref<1xi32, #tpu.memory_space<smem>>) -> (i32, i32) {
    %c0_i32 = arith.constant 0 : i32
    %c0_i32_0 = arith.constant 0 : i32
    %c0_i32_1 = arith.constant 0 : i32
    return %c0_i32, %c0_i32_0 : i32, i32
  }
  func.func @transform_3(%arg0: i32, %arg1: memref<1xi32, #tpu.memory_space<smem>>) -> (i32, i32) {
    %c0_i32 = arith.constant 0 : i32
    %c0_i32_0 = arith.constant 0 : i32
    %c0_i32_1 = arith.constant 0 : i32
    return %c0_i32, %c0_i32_0 : i32, i32
  }
  func.func @transform_4(%arg0: i32, %arg1: memref<1xi32, #tpu.memory_space<smem>>) -> (i32, i32) {
    %c0_i32 = arith.constant 0 : i32
    %c0_i32_0 = arith.constant 0 : i32
    return %arg0, %c0_i32 : i32, i32
  }
  func.func @transform_5(%arg0: i32, %arg1: memref<1xi32, #tpu.memory_space<smem>>) -> (i32, i32, i32) {
    %c0_i32 = arith.constant 0 : i32
    %c0_i32_0 = arith.constant 0 : i32
    %c0_i32_1 = arith.constant 0 : i32
    return %arg0, %c0_i32, %c0_i32_0 : i32, i32, i32
  }
}

module attributes {stable_mosaic.version = 11 : i64} {
  func.func @norm_kernel(%arg0: i32, %arg1: memref<8x128xf32, #tpu.memory_space<vmem>>, %arg2: memref<2x128xf32, #tpu.memory_space<vmem>>, %arg3: memref<8x128xf32, #tpu.memory_space<vmem>>) attributes {dimension_semantics = [#tpu.dimension_semantics<parallel>], iteration_bounds = array<i64: 1>, scalar_prefetch = 0 : i64, scratch_operands = 0 : i64, tpu.core_type = #tpu.core_type<tc>, window_params = [{transform_indices = @transform_0, window_bounds = array<i64: 8, 128>}, {pipeline_mode = #tpu.pipeline_mode<synchronous>, transform_indices = @transform_1, window_bounds = array<i64: 2, 128>}, {transform_indices = @transform_2, window_bounds = array<i64: 8, 128>}]} {
    %c0 = arith.constant 0 : index
    %c0_0 = arith.constant 0 : index
    %0 = vector.load %arg1[%c0, %c0_0] : memref<8x128xf32, #tpu.memory_space<vmem>>, vector<8x128xf32>
    %c0_1 = arith.constant 0 : index
    %c0_2 = arith.constant 0 : index
    %1 = vector.load %arg2[%c0_1, %c0_2] : memref<2x128xf32, #tpu.memory_space<vmem>>, vector<1x128xf32>
    %2 = vector.broadcast %1 : vector<1x128xf32> to vector<8x128xf32>
    %3 = arith.mulf %0, %2 : vector<8x128xf32>
    %c1 = arith.constant 1 : index
    %c0_3 = arith.constant 0 : index
    %4 = vector.load %arg2[%c1, %c0_3] : memref<2x128xf32, #tpu.memory_space<vmem>>, vector<1x128xf32>
    %5 = vector.broadcast %4 : vector<1x128xf32> to vector<8x128xf32>
    %6 = arith.addf %3, %5 : vector<8x128xf32>
    %c0_4 = arith.constant 0 : index
    %c0_5 = arith.constant 0 : index
    %7 = vector.load %arg3[%c0_4, %c0_5] : memref<8x128xf32, #tpu.memory_space<vmem>>, vector<8x128xf32>
    tpu.vector_store %arg3[%c0_4, %c0_5], %6 {strides = array<i32>} : memref<8x128xf32, #tpu.memory_space<vmem>>, vector<8x128xf32>,
    return
  }
  func.func @transform_0(%arg0: i32) -> (i32, i32) {
    %c0_i32 = arith.constant 0 : i32
    %c0_i32_0 = arith.constant 0 : i32
    return %arg0, %c0_i32 : i32, i32
  }
  func.func @transform_1(%arg0: i32) -> (i32, i32) {
    %c0_i32 = arith.constant 0 : i32
    %c0_i32_0 = arith.constant 0 : i32
    %c0_i32_1 = arith.constant 0 : i32
    return %c0_i32, %c0_i32_0 : i32, i32
  }
  func.func @transform_2(%arg0: i32) -> (i32, i32) {
    %c0_i32 = arith.constant 0 : i32
    %c0_i32_0 = arith.constant 0 : i32
    return %arg0, %c0_i32 : i32, i32
  }
}

</mosaic_0001>

<bundles_post_ra>
// kernel: linear_net_forward.7
= control target key start
LH: loop header
LB: loop body
LE: loop exit
PB: predicated region body
PF: predicated region fallthrough
CT: control target
= control target key end

     0   :  { %s104_s0 = inlined_call_operand.vmem [shape: f32[8,128], index: 0, kind: input, shape index: {}]   ;;  %s105_s1 = inlined_call_operand.vmem [shape: f32[2,128], index: 1, kind: input, shape index: {}]   ;;  %s106_s2 = inlined_call_operand.hbm [shape: f32[8,128], index: 2, kind: output, shape index: {}]  }
   0x1   :  { %v12_v0 = vld [vmem:[%s104_s0] sm:$0xff] }
   0x2   :  { %v40_v1 = vld [vmem:[%s105_s1] ss:$0 sm:$0xff]  ;;  %v41_v2 = vld [vmem:[%s105_s1 + $0x1] ss:$0 sm:$0xff] }
   0x3   :  { %v18_v3 = vmul.f32 %v40_v1, %v12_v0 }
   0x4   :  { %7 = vsyncpa [#allocation3], 0  ;;  %s67_s15 = smov [#allocation2]  }
   0x5   :  { %s32_s16 = sshll.u32 %s67_s15, 4  ;;  %v24_v4 = vadd.f32 %v41_v2, %v18_v3  ;;  %s33_s16 = int_to_ptr.vmem [resolvable:$true] %s32_s16 }
   0x6   :  { %s43_s17 = scalar_lea.vmem %s33_s16, 128  ;;  %p48_p1 = scmp.lt.s32.totalorder %s33_s16, %s33_s16 }
   0x7   :  { %25 = vst [vmem:[#allocation2] sm:$0xff] %v24_v4  ;;  %p44_p0 = scmp.ne.s32.totalorder %s33_s16, %s43_s17  ;;  %p49_p2 = scmp.lt.s32.totalorder %s43_s17, %s43_s17 }
   0x9   :  { %p50_p3 = por %p49_p2, %p48_p1 }
   0xb   :  { %p51_p4 = pnand %p50_p3, %p44_p0 }
   0xd   :  { %54 = shalt.err (!%p51_p4)
}
   0xe   :  { %s55_s19 = scalar_lea.hbm %s106_s2, 128 }
   0xf   :  { %p56_p5 = scmp.ne.s32.totalorder %s106_s2, %s55_s19  ;;  %p59_p6 = scmp.lt.u32.totalorder %s55_s19, %s106_s2 }
  0x11   :  { %p61_p7 = pnand %p59_p6, %p56_p5 }
  0x13   :  { %64 = shalt.err (!%p61_p7)
}
  0x14   :  { %35 = dma.vmem_to_hbm [thread:$0]  %s33_s16, 128, %s106_s2, [#allocation3]  }
  0x15   :  { %65 = dma.done.wait [#allocation3], 128  }
  0x16   :  { %66 = vsyncadd [#allocation3], 4294967168 }
  0x17   :  { %39 = vsyncpa [#allocation3], 1 }

// kernel: linear_net_forward.4
= control target key start
LH: loop header
LB: loop body
LE: loop exit
PB: predicated region body
PF: predicated region fallthrough
CT: control target
= control target key end

     0   :  { %v231_v0 = vmov 0.0   ;;  %vm232_vm0 = vmmov 0   ;;  %v148_v15 = vlaneseq  ;;  %vm170_vm2 = vcmask 1040384   ;;  %s313_s3 = inlined_call_operand.vmem [shape: bf16[128,128], index: 3, kind: input, shape index: {}]   ;;  %s314_s1 = inlined_call_operand.vmem [shape: f32[8,128], index: 1, kind: input, shape index: {}]   ;;  %s315_s2 = inlined_call_operand.vmem [shape: f32[2,128], index: 2, kind: input, shape index: {}]   ;;  %s316_s0 = inlined_call_operand.<no memory space> [shape: s32[1], index: 0, kind: input, shape index: {}]   ;;  %s317_s4 = inlined_call_operand.vmem [shape: f32[1,128], index: 4, kind: input, shape index: {}]   ;;  %s318_s5 = inlined_call_operand.vmem [shape: f32[8,128], index: 5, kind: output, shape index: {0}]   ;;  %s319_s6 = inlined_call_operand.vmem [shape: f32[1,2,128], index: 6, kind: output, shape index: {1}]  }
   0x1   :  { %201 = vmatprep.subr.bf16.mxu0 %v231_v0  ;;  %v223_v1 = vld [vmem:[%s313_s3] sm:$0xff]   ;;  %217 = vmatprep.mubr.msk.bf16.mxu0 %vm232_vm0, %v231_v0  ;;  %v224_v2 = vld [vmem:[%s313_s3 + $0x8] sm:$0xff]   ;;  %v225_v3 = vld [vmem:[%s313_s3 + $0x10] sm:$0xff]   ;;  %v154_v17 = vstv %s316_s0 }
   0x2   :  { %202 = vmatpush3.bf16.msra.mxu0 %v223_v1  ;;  %v226_v4 = vld [vmem:[%s313_s3 + $0x18] sm:$0xff]   ;;  %v227_v5 = vld [vmem:[%s313_s3 + $0x20] sm:$0xff]   ;;  %v228_v6 = vld [vmem:[%s313_s3 + $0x28] sm:$0xff]   ;;  %v149_v16 = vshrl.u32 %v148_v15, 7 }
   0x3   :  { %203 = vmatprep.subr.bf16.mxu0 %v231_v0  ;;  %v22_v7 = vld [vmem:[%s314_s1] sm:$0xff]  ;;  %v229_v10 = vld [vmem:[%s313_s3 + $0x30] sm:$0xff]   ;;  %v230_v13 = vld [vmem:[%s313_s3 + $0x38] sm:$0xff]  }
   0x4   :  { %v181_v8 = vld [vmem:[%s315_s2] ss:$0 sm:$0xff]  ;;  %v182_v11 = vld [vmem:[%s315_s2 + $0x1] ss:$0 sm:$0xff]  ;;  %vm155_vm1 = vcmp.lt.s32.totalorder %v149_v16, %v154_v17 }
   0x5   :  { %v28_v9 = vmul.f32 %v181_v8, %v22_v7  ;;  %v183_v18 = vld [vmem:[%s317_s4] ss:$0 sm:$0xff] }
   0x6   :  { %204 = vmatpush3.bf16.msra.mxu0 %v224_v2 }
   0x7   :  { %205 = vmatprep.subr.bf16.mxu0 %v231_v0  ;;  %v34_v12 = vadd.f32 %v182_v11, %v28_v9 }
   0x9   :  { %v35_v14 = vpack.c.bf16 %v34_v12, %v34_v12 }
   0xa   :  { %206 = vmatpush3.bf16.msra.mxu0 %v225_v3 }
   0xb   :  { %207 = vmatprep.subr.bf16.mxu0 %v231_v0 }
   0xe   :  { %208 = vmatpush3.bf16.msra.mxu0 %v226_v4 }
   0xf   :  { %209 = vmatprep.subr.bf16.mxu0 %v231_v0 }
  0x12   :  { %210 = vmatpush3.bf16.msra.mxu0 %v227_v5 }
  0x13   :  { %211 = vmatprep.subr.bf16.mxu0 %v231_v0 }
  0x16   :  { %212 = vmatpush3.bf16.msra.mxu0 %v228_v6 }
  0x17   :  { %213 = vmatprep.subr.bf16.mxu0 %v231_v0 }
  0x1a   :  { %214 = vmatpush3.bf16.msra.mxu0 %v229_v10 }
  0x1b   :  { %215 = vmatprep.subr.bf16.mxu0 %v231_v0 }
  0x1e   :  { %216 = vmatpush3.bf16.msra.mxu0 %v230_v13 }
  0x21   :  { %218 = vmatmul.mubr.bf16.vlgmr.msra.gmra.mrb[0].mxu0 %v35_v14 }
  0xf4   :  { %v141_v19 = vpop.f32.mrb[0].mxu0 }
  0xf5   :  { %v142_v20 = vadd.f32 %v183_v18, %v141_v19  ;;  %v219_v21 = vpop.f32.mrb[1].mxu0 }
  0xf6   :  { %v144_v22 = vpop.f32.mrb[2].mxu0 }
  0xf7   :  { %147 = vst [vmem:[%s318_s5] sm:$0xff] %v142_v20  ;;  %v156_v23 = vsel %vm155_vm1, %v142_v20, 0.0  ;;  %v220_v24 = vpop.f32.mrb[3].mxu0 }
  0xf8   :  { %v157_v25 = vrot.slane %v156_v23, 4  ;;  %v163_v26 = vmul.f32 %v156_v23, %v156_v23 }
  0xfa   :  { %v158_v27 = vadd.f32 %v157_v25, %v156_v23  ;;  %v164_v28 = vrot.slane %v163_v26, 4 }
  0xfc   :  { %v159_v29 = vrot.slane %v158_v27, 2  ;;  %v165_v30 = vadd.f32 %v164_v28, %v163_v26 }
  0xfe   :  { %v160_v31 = vadd.f32 %v159_v29, %v158_v27  ;;  %v166_v32 = vrot.slane %v165_v30, 2 }
 0x100   :  { %v161_v33 = vrot.slane %v160_v31, 1  ;;  %v167_v34 = vadd.f32 %v166_v32, %v165_v30 }
 0x102   :  { %v168_v35 = vrot.slane %v167_v34, 1  ;;  %v162_v36 = vadd.f32 %v161_v33, %v160_v31 }
 0x104   :  { %v169_v37 = vadd.f32 %v168_v35, %v167_v34 }
 0x106   :  { %v171_v38 = vsel %vm170_vm2, %v162_v36, %v169_v37 }
 0x107   :  { %172 = vst [vmem:[%s319_s6] sm:$0x3] %v171_v38 }

</bundles_post_ra>
